<compile_context>
chip_gen: v5e
topology: v5e:2x2
jax: 0.10.0
libtpu: 0.0.40
codegen_flags: <defaults>
</compile_context>

<pallas_src>
import jax
import jax.numpy as jnp
import numpy as np
from jax.experimental import pallas as pl
from jax.experimental.pallas import tpu as pltpu


# ------------------------------ Pallas kernel ------------------------------ #
def _frame_embed_kernel(h_ref, w_ref, b_ref, o_ref):
    """Fused overlapping-frame extraction + Linear for one batch chunk.

    h_ref : (tile_b, n_chunks, SC)  stride-chunk view of the input rows
    w_ref : (D, D)   Linear weight: input dim permuted to patch-major, transposed
    b_ref : (1, D)   Linear bias
    o_ref : (tile_b * FrameNum, D)
    """
    h = h_ref[...]                         # (tile_b, n_chunks, SC)
    tb, n_chunks, sc = h.shape
    m, d_out = o_ref.shape                 # (tile_b*F, D)
    frames = m // tb
    k = n_chunks - frames + 1              # chunks per frame (= PatchSize // Stride)

    # Frame i = chunks [i, i+k).  Contracting each shifted chunk-slice against
    # the matching row-block of the weight is exactly `feats @ W_k` with the
    # K dimension split into k stride-sized pieces -- no feature matrix is
    # ever assembled, no cross-lane shuffling is needed.
    out = jnp.zeros((m, d_out), dtype=jnp.float32)
    for j in range(k):                     # tiny static loop, fully unrolled
        chunk = h[:, j:j + frames, :].reshape(m, sc)         # (tile_b*F, SC)
        out = out + jnp.dot(chunk, w_ref[j * sc:(j + 1) * sc, :],
                            preferred_element_type=jnp.float32)
    o_ref[...] = (out + b_ref[...]).astype(o_ref.dtype)


# ------------------------------ pallas_call --------------------------------- #
def _pick_tile_b(B, frames):
    # Small batches: the whole job is one matmul -> a single grid step.
    # Large batches: ~512 output rows per step amortize the ~0.35us/step
    # pipeline overhead, keep output blocks sublane-aligned, and give v7x's
    # two TensorCores a real "parallel" axis to split.
    if B <= 8:
        return B
    target = max(1, 512 // frames)
    for t in range(min(B, target), 0, -1):
        if B % t == 0 and (t * frames) % 8 == 0:
            return t
    return B


def frame_embedding_pallas(h, w_kernel, bias2, *, frames):
    """h: (B, n_chunks, SC); w_kernel: (D, D); bias2: (1, D) -> (B*frames, D)."""
    B, n_chunks, sc = h.shape
    D = w_kernel.shape[1]
    tile_b = _pick_tile_b(B, frames)
    grid = (B // tile_b,)

    return pl.pallas_call(
        _frame_embed_kernel,
        out_shape=jax.ShapeDtypeStruct((B * frames, D), h.dtype),
        grid=grid,
        in_specs=[
            pl.BlockSpec((tile_b, n_chunks, sc), lambda g: (g, 0, 0)),
            pl.BlockSpec((D, D), lambda g: (0, 0)),
            pl.BlockSpec((1, D), lambda g: (0, 0)),
        ],
        out_specs=pl.BlockSpec((tile_b * frames, D), lambda g: (g, 0)),
        compiler_params=pltpu.CompilerParams(
            dimension_semantics=("parallel",)),
    )(h, w_kernel, bias2)


# ---------------------- parameter prep (outside hot path) ------------------- #
def prepare_params(weight, bias, patch_size, channel):
    """One-time weight/bias preparation (module-init time, not per call).

    Permutes the Linear weight's input columns from the module's channel-major
    packing (c*P + p) to the kernel's patch-major packing (p*C + c), and
    pre-transposes so the kernel contracts with a plain jnp.dot.
    """
    D = patch_size * channel
    perm = np.arange(D).reshape(channel, patch_size).T.reshape(-1)  # perm[p*C+c] = c*P+p
    w_kernel = jnp.asarray(weight)[:, perm].T        # (D_in patch-major, D_out)
    bias2 = jnp.asarray(bias).reshape(1, D)
    return w_kernel, bias2


# --------------------------------- forward ---------------------------------- #
def frame_forward(x, w_kernel, bias2, *, patch_size, stride, frame_num):
    """x: (B, L, C) -> (B, frame_num, patch_size*C), matching Frame.forward."""
    B, L, C = x.shape
    D = patch_size * C
    L_used = (frame_num - 1) * stride + patch_size
    x = x[:, :L_used, :]

    if patch_size % stride == 0:
        # Free reshape view into stride-sized chunks; frame i = chunks [i, i+k).
        sc = stride * C
        h = x.reshape(B, L_used * C // sc, sc)
    else:
        # TODO(synk): non-divisible stride falls back to a wrapper-side gather
        # (patch-major packing); the Linear still runs fused in the kernel.
        idx = jnp.arange(frame_num)[:, None] * stride + jnp.arange(patch_size)[None, :]
        h = x[:, idx, :].reshape(B, frame_num, D)

    out = frame_embedding_pallas(h, w_kernel, bias2, frames=frame_num)
    return out.reshape(B, frame_num, D)


# ----------------------------------- main ------------------------------------ #
if __name__ == "__main__":
    # Module hyper-parameters (consistent with Frame.__init__).
    channel = 4
    patch_size = 4
    n_patch = 8                                  # FrameNum
    overlap = 0.5
    stride = int(patch_size * overlap)           # 2
    D = patch_size * channel                     # 16

    B = 2
    L = (n_patch - 1) * stride + patch_size      # 18 (minimum valid seq length)

    key = jax.random.PRNGKey(0)
    kx, kw, kb = jax.random.split(key, 3)
    x = jax.random.normal(kx, (B, L, channel), dtype=jnp.float32)
    bound = 1.0 / np.sqrt(D)                     # PyTorch Linear init bound
    weight = jax.random.uniform(kw, (D, D), jnp.float32, -bound, bound)
    bias = jax.random.uniform(kb, (D,), jnp.float32, -bound, bound)

    w_kernel, bias2 = prepare_params(weight, bias, patch_size, channel)
    out = frame_forward(x, w_kernel, bias2, patch_size=patch_size,
                        stride=stride, frame_num=n_patch)
    out = jax.block_until_ready(out)

    # Pure-JAX reference mirroring the PyTorch forward (channel-major packing).
    idx = jnp.arange(n_patch)[:, None] * stride + jnp.arange(patch_size)[None, :]
    patches = x[:, idx, :]                                    # (B, F, P, C)
    feats_cm = jnp.transpose(patches, (0, 1, 3, 2)).reshape(B, n_patch, D)
    ref = jnp.einsum("bfd,ed->bfe", feats_cm, weight,
                     precision=jax.lax.Precision.HIGHEST) + bias

    np.testing.assert_allclose(np.asarray(out), np.asarray(ref),
                               rtol=1e-5, atol=1e-5)
    print("KERNEL_OK")
</pallas_src>

<mosaic_0001>
module attributes {stable_mosaic.version = 11 : i64} {
  func.func @_frame_embed_kernel(%arg0: i32, %arg1: memref<2x9x8xf32, #tpu.memory_space<vmem>>, %arg2: memref<16x16xf32, #tpu.memory_space<vmem>>, %arg3: memref<1x16xf32, #tpu.memory_space<vmem>>, %arg4: memref<16x16xf32, #tpu.memory_space<vmem>>) attributes {dimension_semantics = [#tpu.dimension_semantics<parallel>], iteration_bounds = array<i64: 1>, scalar_prefetch = 0 : i64, scratch_operands = 0 : i64, tpu.core_type = #tpu.core_type<tc>, window_params = [{transform_indices = @transform_0, window_bounds = array<i64: 2, 9, 8>}, {pipeline_mode = #tpu.pipeline_mode<synchronous>, transform_indices = @transform_1, window_bounds = array<i64: 16, 16>}, {pipeline_mode = #tpu.pipeline_mode<synchronous>, transform_indices = @transform_2, window_bounds = array<i64: 1, 16>}, {transform_indices = @transform_3, window_bounds = array<i64: 16, 16>}]} {
    %c0 = arith.constant 0 : index
    %c0_0 = arith.constant 0 : index
    %c0_1 = arith.constant 0 : index
    %0 = vector.load %arg1[%c0, %c0_0, %c0_1] : memref<2x9x8xf32, #tpu.memory_space<vmem>>, vector<2x9x8xf32>
    %cst = arith.constant 0.000000e+00 : f32
    %1 = vector.broadcast %cst : f32 to vector<16x16xf32>
    %2 = vector.extract_strided_slice %0 {offsets = [0, 0, 0], sizes = [2, 8, 8], strides = [1, 1, 1]} : vector<2x9x8xf32> to vector<2x8x8xf32>
    %3 = vector.shape_cast %2 : vector<2x8x8xf32> to vector<16x8xf32>
    %c0_2 = arith.constant 0 : index
    %c0_3 = arith.constant 0 : index
    %4 = vector.load %arg2[%c0_2, %c0_3] : memref<16x16xf32, #tpu.memory_space<vmem>>, vector<8x16xf32>
    %cst_4 = arith.constant dense<0.000000e+00> : vector<16x16xf32>
    %5 = tpu.matmul %3, %4, %cst_4 {dimension_numbers = #tpu.dot_dimension_numbers<[1], [0], [0], [1], [0, 0, 1, 1], [], []>} : vector<16x8xf32>, vector<8x16xf32>, vector<16x16xf32> -> vector<16x16xf32>
    %6 = arith.addf %1, %5 : vector<16x16xf32>
    %7 = vector.extract_strided_slice %0 {offsets = [0, 1, 0], sizes = [2, 8, 8], strides = [1, 1, 1]} : vector<2x9x8xf32> to vector<2x8x8xf32>
    %8 = vector.shape_cast %7 : vector<2x8x8xf32> to vector<16x8xf32>
    %c8 = arith.constant 8 : index
    %c0_5 = arith.constant 0 : index
    %9 = vector.load %arg2[%c8, %c0_5] : memref<16x16xf32, #tpu.memory_space<vmem>>, vector<8x16xf32>
    %cst_6 = arith.constant dense<0.000000e+00> : vector<16x16xf32>
    %10 = tpu.matmul %8, %9, %cst_6 {dimension_numbers = #tpu.dot_dimension_numbers<[1], [0], [0], [1], [0, 0, 1, 1], [], []>} : vector<16x8xf32>, vector<8x16xf32>, vector<16x16xf32> -> vector<16x16xf32>
    %11 = arith.addf %6, %10 : vector<16x16xf32>
    %c0_7 = arith.constant 0 : index
    %c0_8 = arith.constant 0 : index
    %12 = vector.load %arg3[%c0_7, %c0_8] : memref<1x16xf32, #tpu.memory_space<vmem>>, vector<1x16xf32>
    %13 = vector.broadcast %12 : vector<1x16xf32> to vector<16x16xf32>
    %14 = arith.addf %11, %13 : vector<16x16xf32>
    %c0_9 = arith.constant 0 : index
    %c0_10 = arith.constant 0 : index
    %15 = vector.load %arg4[%c0_9, %c0_10] : memref<16x16xf32, #tpu.memory_space<vmem>>, vector<16x16xf32>
    tpu.vector_store %arg4[%c0_9, %c0_10], %14 {strides = array<i32>} : memref<16x16xf32, #tpu.memory_space<vmem>>, vector<16x16xf32>,
    return
  }
  func.func @transform_0(%arg0: i32) -> (i32, i32, i32) {
    %c0_i32 = arith.constant 0 : i32
    %c0_i32_0 = arith.constant 0 : i32
    %c0_i32_1 = arith.constant 0 : i32
    return %arg0, %c0_i32, %c0_i32_0 : i32, i32, i32
  }
  func.func @transform_1(%arg0: i32) -> (i32, i32) {
    %c0_i32 = arith.constant 0 : i32
    %c0_i32_0 = arith.constant 0 : i32
    %c0_i32_1 = arith.constant 0 : i32
    return %c0_i32, %c0_i32_0 : i32, i32
  }
  func.func @transform_2(%arg0: i32) -> (i32, i32) {
    %c0_i32 = arith.constant 0 : i32
    %c0_i32_0 = arith.constant 0 : i32
    %c0_i32_1 = arith.constant 0 : i32
    return %c0_i32, %c0_i32_0 : i32, i32
  }
  func.func @transform_3(%arg0: i32) -> (i32, i32) {
    %c0_i32 = arith.constant 0 : i32
    %c0_i32_0 = arith.constant 0 : i32
    return %arg0, %c0_i32 : i32, i32
  }
}

</mosaic_0001>

<bundles_post_ra>
// kernel: tpu_custom_call.1
= control target key start
LH: loop header
LB: loop body
LE: loop exit
PB: predicated region body
PF: predicated region fallthrough
CT: control target
= control target key end

     0   :  { %vm24_vm0 = vcmask 1046528   ;;  %vm32_vm1 = vcmask 64512   ;;  %s203_s0 = inlined_call_operand.vmem [shape: f32[2,9,8], index: 0, kind: input, shape index: {}]   ;;  %s204_s1 = inlined_call_operand.vmem [shape: f32[16,16], index: 1, kind: input, shape index: {}]   ;;  %s205_s2 = inlined_call_operand.vmem [shape: f32[1,16], index: 2, kind: input, shape index: {}]   ;;  %s206_s3 = inlined_call_operand.hbm [shape: f32[16,16], index: 3, kind: output, shape index: {}]  }
   0x1   :  { %v31_v0 = vld [vmem:[%s204_s1 + $0x8] sm:$0xff]  ;;  %v19_v1 = vld [vmem:[%s204_s1] sm:$0xff]  ;;  %v17_v2 = vld [vmem:[%s203_s0 + $0x10] sm:$0xff] }
   0x2   :  { %118 = vmatpush.msra.mxu2 %v31_v0  ;;  %119 = vmatpush.msra.mxu3 %v19_v1  ;;  %v18_v3 = vld [vmem:[%s203_s0 + $0x18] sm:$0x1]  ;;  %v28_v4 = vrot.slane %v17_v2, 1  ;;  %v15_v5 = vld [vmem:[%s203_s0] sm:$0xff]  ;;  %v16_v6 = vld [vmem:[%s203_s0 + $0x8] sm:$0x1] }
   0x3   :  { %v29_v7 = vrot.slane %v18_v3, 1  ;;  %117 = vmatmul.msk.f32.vlgmr.msra.gmra.mxu3 %vm32_vm1, %v17_v2  ;;  %52 = vmatpush.msra.mxu0 %v31_v0  ;;  %v25_v8 = vrot.slane %v15_v5, 1  ;;  %v26_v9 = vrot.slane %v16_v6, 1 }
   0x4   :  { %79 = vmatpush.msra.mxu1 %v19_v1 }
   0x5   :  { %8 = vsyncpa [#allocation3], 0  ;;  %v30_v10 = vsel %vm24_vm0, %v28_v4, %v29_v7  ;;  %v27_v11 = vsel %vm24_vm0, %v25_v8, %v26_v9  ;;  %116 = vmatmul.msk.f32.vlgmr.msra.gmra.mxu1 %vm32_vm1, %v15_v5  ;;  %v123_v13 = vld [vmem:[%s205_s2] ss:$0 sm:$0xff]  ;;  %vm93_vm2 = vcmask 130048   ;;  %s150_s24 = smov [#allocation2]  }
   0x6   :  { %115 = vmatmul.msk.f32.vlgmr.msra.gmra.mxu2 %vm32_vm1, %v30_v10  ;;  %114 = vmatmul.msk.f32.vlgmr.msra.gmra.mxu0 %vm32_vm1, %v27_v11  ;;  %s100_s25 = sshll.u32 %s150_s24, 4  ;;  %s102_s28 = sshll.u32 %s206_s3, 4  ;;  %s101_s25 = int_to_ptr.vmem [resolvable:$true] %s100_s25  ;;  %s103_s28 = int_to_ptr.hbm [resolvable:$true] %s102_s28 }
   0x7   :  { %s151_s29 = smov 128   ;;  %s152_s2 = smov 8  }
  0x82   :  { %v81_v12 = vpop.f32.mrf.mxu1 }
  0x83   :  { %v54_v14 = vpop.f32.mrf.mxu0 }
  0x84   :  { %v82_v15 = vadd.f32 %v81_v12, %v54_v14 }
  0x86   :  { %v91_v16 = vadd.f32 %v123_v13, %v82_v15  ;;  %v84_v17 = vpop.f32.mrf.mxu3 }
  0x88   :  { %94 = vst.msk [vmem:[#allocation2] sm:$0xff] %vm93_vm2, %v91_v16 }
  0x89   :  { %v57_v18 = vpop.f32.mrf.mxu2 }
  0x8a   :  { %v85_v19 = vadd.f32 %v84_v17, %v57_v18 }
  0x8c   :  { %v92_v20 = vadd.f32 %v123_v13, %v85_v19 }
  0x8e   :  { %95 = vst.msk [vmem:[#allocation2 + $0x8] sm:$0xff] %vm93_vm2, %v92_v20 }
  0x8f   :  { %108 = dma.vmem_to_hbm [thread:$0]  %s101_s25, 256, %s103_s28, [#allocation3], %s151_s29, %s151_s29, %s152_s2  }
  0x90   :  { %148 = dma.done.wait [#allocation3], 256  }
  0x91   :  { %149 = vsyncadd [#allocation3], 4294967040 }
  0x92   :  { %113 = vsyncpa [#allocation3], 1 }

</bundles_post_ra>
